<compile_context>
chip_gen: v7x
topology: tpu7x:2x2x1
jax: 0.10.0
libtpu: 0.0.40
codegen_flags: <defaults>
</compile_context>

<pallas_src>
import functools

import jax
import jax.numpy as jnp
from jax.experimental import pallas as pl
from jax.experimental.pallas import tpu as pltpu


# ---------------------------------------------------------------------------
# Fused MLP Pallas kernel (all Linear layers + interleaved ReLUs in one call).
# ---------------------------------------------------------------------------

def _round_up(v, m):
    return (v + m - 1) // m * m


def _mlp_kernel(*refs):
    """refs = (x_ref, w0, b0, w1, b1, ..., out_ref); feature dims pre-padded to 128."""
    x_ref, out_ref = refs[0], refs[-1]
    wb = refs[1:-1]
    n_layers = len(wb) // 2

    h = x_ref[...]                                        # (bt, in_pad) f32
    for l in range(n_layers):
        w = wb[2 * l][...]                                # (in_pad_l, out_pad_l) bf16
        b = wb[2 * l + 1][...]                            # (1, out_pad_l) f32
        # bf16 operands on the MXU, f32 accumulation; bias/ReLU on the f32 VPU path.
        h = jnp.dot(h.astype(jnp.bfloat16), w,
                    preferred_element_type=jnp.float32) + b
        if l < n_layers - 1:                              # ReLU on all but last layer
            h = jnp.maximum(h, 0.0)
    out_ref[...] = h.astype(out_ref.dtype)


@functools.partial(jax.jit, static_argnames=("out_dim", "batch_tile"))
def mlp_forward(x, packed_params, *, out_dim, batch_tile=256):
    """x: (N, d) f32.  packed_params: flat tuple (w0_bf16, b0_f32, w1, b1, ...),
    all feature dims already padded to multiples of 128.  Returns (N, out_dim) f32."""
    n, d = x.shape
    in_pad = packed_params[0].shape[0]
    out_pad = packed_params[-2].shape[1]

    if d != in_pad:                                       # lane-pad the input features
        x = jnp.pad(x, ((0, 0), (0, in_pad - d)))

    # Large, sublane-aligned batch tile (16-row multiple for bf16 packing),
    # clamped so we don't request a block wildly larger than a tiny batch.
    bt = min(batch_tile, _round_up(n, 16))
    n_tiles = pl.cdiv(n, bt)

    in_specs = [pl.BlockSpec((bt, in_pad), lambda i: (i, 0))]
    for p in packed_params:
        # Grid-invariant weight/bias blocks, fully VMEM-resident.
        in_specs.append(pl.BlockSpec(p.shape, lambda i: (0, 0)))
    out_spec = pl.BlockSpec((bt, out_pad), lambda i: (i, 0))

    # Advisory cost estimate for XLA's scheduler.
    flops = 2 * n * sum(int(w.shape[0]) * int(w.shape[1]) for w in packed_params[::2])
    param_bytes = sum(int(p.size) * p.dtype.itemsize for p in packed_params)
    bytes_accessed = n * in_pad * 4 + n * out_pad * 4 + param_bytes

    # Explicit scoped-VMEM budget: double-buffered x/out tiles + resident params
    # + intermediate activations, with generous headroom (capped at v7x physical).
    est = 2 * bt * (in_pad + out_pad) * 4 + 2 * param_bytes + 4 * bt * max(in_pad, out_pad) * 4
    vmem_limit = int(min(max(3 * est, 32 * 1024 * 1024), 64 * 1024 * 1024))

    out = pl.pallas_call(
        _mlp_kernel,
        out_shape=jax.ShapeDtypeStruct((n, out_pad), x.dtype),
        grid_spec=pltpu.PrefetchScalarGridSpec(
            num_scalar_prefetch=0,
            grid=(n_tiles,),
            in_specs=in_specs,
            out_specs=out_spec,
        ),
        compiler_params=pltpu.CompilerParams(
            dimension_semantics=("parallel",),
            vmem_limit_bytes=vmem_limit,
        ),
        cost_estimate=pl.CostEstimate(
            flops=flops, transcendentals=0, bytes_accessed=bytes_accessed),
    )(x, *packed_params)

    return out[:, :out_dim]


# ---------------------------------------------------------------------------
# Parameter construction (PyTorch nn.Linear-style init, weights stored (in, out)).
# ---------------------------------------------------------------------------

def init_mlp_params(key, input_dim, output_dim, depth, breadth):
    if depth == 1:
        dims = [(input_dim, output_dim)]
    else:
        dims = [(input_dim, breadth)]
        for _ in range(depth - 1):
            dims.append((breadth, breadth))
        dims.append((breadth, output_dim))

    params = []
    for fan_in, fan_out in dims:
        key, kw, kb = jax.random.split(key, 3)
        bound = 1.0 / float(fan_in) ** 0.5
        w = jax.random.uniform(kw, (fan_in, fan_out), jnp.float32, -bound, bound)
        b = jax.random.uniform(kb, (fan_out,), jnp.float32, -bound, bound)
        params.append((w, b))
    return params


def pack_mlp_params(params):
    """Zero-pad feature dims to multiples of 128; weights -> bf16, biases -> (1, out_pad) f32."""
    packed = []
    for w, b in params:
        fi, fo = w.shape
        fi_p, fo_p = _round_up(fi, 128), _round_up(fo, 128)
        w_p = jnp.zeros((fi_p, fo_p), jnp.float32).at[:fi, :fo].set(w).astype(jnp.bfloat16)
        b_p = jnp.zeros((1, fo_p), jnp.float32).at[0, :fo].set(b)
        packed.append(w_p)
        packed.append(b_p)
    return tuple(packed)


# ---------------------------------------------------------------------------
# GNN forward (message passing with 'min' aggregation, use_x_i=False).
# ---------------------------------------------------------------------------

@functools.partial(jax.jit, static_argnames=("num_iter", "num_graphs", "out_dim"))
def gnn_forward(x, edge_src, edge_dst, edge_weight,
                msg_packed, upd_packed, out_packed,
                *, num_iter, num_graphs, out_dim):
    num_nodes = x.shape[0]
    for _ in range(num_iter):
        # TODO(synk): edge gather + 'min' scatter-aggregation are data-dependent
        # gather/scatter with no clean tile-level Pallas equivalent at these
        # sizes; done with jnp indexing + jax.ops.segment_min.
        x_j = x[edge_src]                                               # (E, 1)
        msg_in = jnp.concatenate([x_j, edge_weight[:, None]], axis=-1)  # (E, 2)
        msg = mlp_forward(msg_in, msg_packed, out_dim=1)                # Pallas MLP
        aggr = jax.ops.segment_min(msg, edge_dst, num_segments=num_nodes)
        x = mlp_forward(aggr, upd_packed, out_dim=1)                    # Pallas MLP

    npg = num_nodes // num_graphs
    final = x.reshape(num_graphs, npg)      # == .view(G, npg, -1).squeeze() for feat dim 1
    if out_packed is not None:
        final = mlp_forward(final, out_packed, out_dim=out_dim)         # Pallas MLP
    return final


# ---------------------------------------------------------------------------
# Pure-JAX f32 reference (mirrors the PyTorch module).
# ---------------------------------------------------------------------------

def mlp_reference(x, params):
    h = x
    for l, (w, b) in enumerate(params):
        h = h @ w + b
        if l < len(params) - 1:
            h = jnp.maximum(h, 0.0)
    return h


def gnn_reference(x, edge_src, edge_dst, edge_weight,
                  msg_params, upd_params, out_params, num_iter, num_graphs):
    num_nodes = x.shape[0]
    for _ in range(num_iter):
        x_j = x[edge_src]
        msg_in = jnp.concatenate([x_j, edge_weight[:, None]], axis=-1)
        msg = mlp_reference(msg_in, msg_params)
        aggr = jax.ops.segment_min(msg, edge_dst, num_segments=num_nodes)
        x = mlp_reference(aggr, upd_params)
    npg = num_nodes // num_graphs
    final = x.reshape(num_graphs, npg)
    if out_params is not None:
        final = mlp_reference(final, out_params)
    return final


# ---------------------------------------------------------------------------

if __name__ == "__main__":
    # Small config consistent with the module:
    #   GNN(num_nodes=8, num_iter=3, message_depth=2, message_breadth=16,
    #       update_depth=2, update_breadth=16, use_x_i=False, aggr='min', out_dim=4)
    # applied to a Batch of 2 graphs with 8 nodes each (16 nodes, 32 directed edges).
    num_graphs = 2
    nodes_per_graph = 8
    num_nodes = num_graphs * nodes_per_graph
    num_iter = 3
    message_depth, message_breadth = 2, 16
    update_depth, update_breadth = 2, 16
    out_dim = 4

    key = jax.random.PRNGKey(0)
    k_x, k_ew, k_m, k_u, k_o = jax.random.split(key, 5)

    x0 = jax.random.normal(k_x, (num_nodes, 1), jnp.float32)

    # Bidirectional ring per graph -> every node has incoming edges (avoids the
    # unspecified isolated-node value under 'min' aggregation).
    src_list, dst_list = [], []
    for g in range(num_graphs):
        off = g * nodes_per_graph
        for i in range(nodes_per_graph):
            j = (i + 1) % nodes_per_graph
            src_list += [off + i, off + j]
            dst_list += [off + j, off + i]
    edge_src = jnp.asarray(src_list, jnp.int32)
    edge_dst = jnp.asarray(dst_list, jnp.int32)
    edge_weight = jax.random.normal(k_ew, (edge_src.shape[0],), jnp.float32)

    msg_params = init_mlp_params(k_m, 2, 1, message_depth, message_breadth)   # use_x_i=False
    upd_params = init_mlp_params(k_u, 1, 1, update_depth, update_breadth)
    out_params = init_mlp_params(k_o, nodes_per_graph, out_dim, 2, 2 * nodes_per_graph)

    msg_packed = pack_mlp_params(msg_params)
    upd_packed = pack_mlp_params(upd_params)
    out_packed = pack_mlp_params(out_params)

    out = gnn_forward(x0, edge_src, edge_dst, edge_weight,
                      msg_packed, upd_packed, out_packed,
                      num_iter=num_iter, num_graphs=num_graphs, out_dim=out_dim)
    out = jax.block_until_ready(out)

    ref = gnn_reference(x0, edge_src, edge_dst, edge_weight,
                        msg_params, upd_params, out_params, num_iter, num_graphs)

    assert out.shape == (num_graphs, out_dim), out.shape
    # bf16 MXU operands vs f32 reference -> loose-ish tolerance.
    assert jnp.allclose(out, ref, atol=5e-2, rtol=5e-2), (
        f"mismatch vs reference, max abs err {float(jnp.max(jnp.abs(out - ref)))}")

    print("KERNEL_OK")
</pallas_src>

<mosaic_0001>
module attributes {stable_mosaic.version = 11 : i64} {
  func.func @_mlp_kernel(%arg0: i32, %arg1: memref<32x128xf32, #tpu.memory_space<vmem>>, %arg2: memref<128x128xbf16, #tpu.memory_space<vmem>>, %arg3: memref<1x128xf32, #tpu.memory_space<vmem>>, %arg4: memref<128x128xbf16, #tpu.memory_space<vmem>>, %arg5: memref<1x128xf32, #tpu.memory_space<vmem>>, %arg6: memref<128x128xbf16, #tpu.memory_space<vmem>>, %arg7: memref<1x128xf32, #tpu.memory_space<vmem>>, %arg8: memref<32x128xf32, #tpu.memory_space<vmem>>) attributes {dimension_semantics = [#tpu.dimension_semantics<parallel>], iteration_bounds = array<i64: 1>, scalar_prefetch = 0 : i64, scratch_operands = 0 : i64, tpu.core_type = #tpu.core_type<tc>, window_params = [{transform_indices = @transform_0, window_bounds = array<i64: 32, 128>}, {pipeline_mode = #tpu.pipeline_mode<synchronous>, transform_indices = @transform_1, window_bounds = array<i64: 128, 128>}, {pipeline_mode = #tpu.pipeline_mode<synchronous>, transform_indices = @transform_2, window_bounds = array<i64: 1, 128>}, {pipeline_mode = #tpu.pipeline_mode<synchronous>, transform_indices = @transform_3, window_bounds = array<i64: 128, 128>}, {pipeline_mode = #tpu.pipeline_mode<synchronous>, transform_indices = @transform_4, window_bounds = array<i64: 1, 128>}, {pipeline_mode = #tpu.pipeline_mode<synchronous>, transform_indices = @transform_5, window_bounds = array<i64: 128, 128>}, {pipeline_mode = #tpu.pipeline_mode<synchronous>, transform_indices = @transform_6, window_bounds = array<i64: 1, 128>}, {transform_indices = @transform_7, window_bounds = array<i64: 32, 128>}]} {
    %c0 = arith.constant 0 : index
    %c0_0 = arith.constant 0 : index
    %0 = vector.load %arg1[%c0, %c0_0] : memref<32x128xf32, #tpu.memory_space<vmem>>, vector<32x128xf32>
    %c0_1 = arith.constant 0 : index
    %c0_2 = arith.constant 0 : index
    %1 = vector.load %arg2[%c0_1, %c0_2] : memref<128x128xbf16, #tpu.memory_space<vmem>>, vector<128x128xbf16>
    %c0_3 = arith.constant 0 : index
    %c0_4 = arith.constant 0 : index
    %2 = vector.load %arg3[%c0_3, %c0_4] : memref<1x128xf32, #tpu.memory_space<vmem>>, vector<1x128xf32>
    %3 = arith.truncf %0 : vector<32x128xf32> to vector<32x128xbf16>
    %cst = arith.constant dense<0.000000e+00> : vector<32x128xf32>
    %4 = tpu.matmul %3, %1, %cst {dimension_numbers = #tpu.dot_dimension_numbers<[1], [0], [0], [1], [0, 0, 1, 1], [], []>} : vector<32x128xbf16>, vector<128x128xbf16>, vector<32x128xf32> -> vector<32x128xf32>
    %5 = vector.broadcast %2 : vector<1x128xf32> to vector<32x128xf32>
    %6 = arith.addf %4, %5 : vector<32x128xf32>
    %cst_5 = arith.constant 0.000000e+00 : f32
    %7 = vector.broadcast %cst_5 : f32 to vector<32x128xf32>
    %8 = arith.maximumf %6, %7 : vector<32x128xf32>
    %c0_6 = arith.constant 0 : index
    %c0_7 = arith.constant 0 : index
    %9 = vector.load %arg4[%c0_6, %c0_7] : memref<128x128xbf16, #tpu.memory_space<vmem>>, vector<128x128xbf16>
    %c0_8 = arith.constant 0 : index
    %c0_9 = arith.constant 0 : index
    %10 = vector.load %arg5[%c0_8, %c0_9] : memref<1x128xf32, #tpu.memory_space<vmem>>, vector<1x128xf32>
    %11 = arith.truncf %8 : vector<32x128xf32> to vector<32x128xbf16>
    %cst_10 = arith.constant dense<0.000000e+00> : vector<32x128xf32>
    %12 = tpu.matmul %11, %9, %cst_10 {dimension_numbers = #tpu.dot_dimension_numbers<[1], [0], [0], [1], [0, 0, 1, 1], [], []>} : vector<32x128xbf16>, vector<128x128xbf16>, vector<32x128xf32> -> vector<32x128xf32>
    %13 = vector.broadcast %10 : vector<1x128xf32> to vector<32x128xf32>
    %14 = arith.addf %12, %13 : vector<32x128xf32>
    %cst_11 = arith.constant 0.000000e+00 : f32
    %15 = vector.broadcast %cst_11 : f32 to vector<32x128xf32>
    %16 = arith.maximumf %14, %15 : vector<32x128xf32>
    %c0_12 = arith.constant 0 : index
    %c0_13 = arith.constant 0 : index
    %17 = vector.load %arg6[%c0_12, %c0_13] : memref<128x128xbf16, #tpu.memory_space<vmem>>, vector<128x128xbf16>
    %c0_14 = arith.constant 0 : index
    %c0_15 = arith.constant 0 : index
    %18 = vector.load %arg7[%c0_14, %c0_15] : memref<1x128xf32, #tpu.memory_space<vmem>>, vector<1x128xf32>
    %19 = arith.truncf %16 : vector<32x128xf32> to vector<32x128xbf16>
    %cst_16 = arith.constant dense<0.000000e+00> : vector<32x128xf32>
    %20 = tpu.matmul %19, %17, %cst_16 {dimension_numbers = #tpu.dot_dimension_numbers<[1], [0], [0], [1], [0, 0, 1, 1], [], []>} : vector<32x128xbf16>, vector<128x128xbf16>, vector<32x128xf32> -> vector<32x128xf32>
    %21 = vector.broadcast %18 : vector<1x128xf32> to vector<32x128xf32>
    %22 = arith.addf %20, %21 : vector<32x128xf32>
    %c0_17 = arith.constant 0 : index
    %c0_18 = arith.constant 0 : index
    %23 = vector.load %arg8[%c0_17, %c0_18] : memref<32x128xf32, #tpu.memory_space<vmem>>, vector<32x128xf32>
    tpu.vector_store %arg8[%c0_17, %c0_18], %22 {strides = array<i32>} : memref<32x128xf32, #tpu.memory_space<vmem>>, vector<32x128xf32>,
    return
  }
  func.func @transform_0(%arg0: i32) -> (i32, i32) {
    %c0_i32 = arith.constant 0 : i32
    %c0_i32_0 = arith.constant 0 : i32
    return %arg0, %c0_i32 : i32, i32
  }
  func.func @transform_1(%arg0: i32) -> (i32, i32) {
    %c0_i32 = arith.constant 0 : i32
    %c0_i32_0 = arith.constant 0 : i32
    %c0_i32_1 = arith.constant 0 : i32
    return %c0_i32, %c0_i32_0 : i32, i32
  }
  func.func @transform_2(%arg0: i32) -> (i32, i32) {
    %c0_i32 = arith.constant 0 : i32
    %c0_i32_0 = arith.constant 0 : i32
    %c0_i32_1 = arith.constant 0 : i32
    return %c0_i32, %c0_i32_0 : i32, i32
  }
  func.func @transform_3(%arg0: i32) -> (i32, i32) {
    %c0_i32 = arith.constant 0 : i32
    %c0_i32_0 = arith.constant 0 : i32
    %c0_i32_1 = arith.constant 0 : i32
    return %c0_i32, %c0_i32_0 : i32, i32
  }
  func.func @transform_4(%arg0: i32) -> (i32, i32) {
    %c0_i32 = arith.constant 0 : i32
    %c0_i32_0 = arith.constant 0 : i32
    %c0_i32_1 = arith.constant 0 : i32
    return %c0_i32, %c0_i32_0 : i32, i32
  }
  func.func @transform_5(%arg0: i32) -> (i32, i32) {
    %c0_i32 = arith.constant 0 : i32
    %c0_i32_0 = arith.constant 0 : i32
    %c0_i32_1 = arith.constant 0 : i32
    return %c0_i32, %c0_i32_0 : i32, i32
  }
  func.func @transform_6(%arg0: i32) -> (i32, i32) {
    %c0_i32 = arith.constant 0 : i32
    %c0_i32_0 = arith.constant 0 : i32
    %c0_i32_1 = arith.constant 0 : i32
    return %c0_i32, %c0_i32_0 : i32, i32
  }
  func.func @transform_7(%arg0: i32) -> (i32, i32) {
    %c0_i32 = arith.constant 0 : i32
    %c0_i32_0 = arith.constant 0 : i32
    return %arg0, %c0_i32 : i32, i32
  }
}

</mosaic_0001>

<bundles_post_ra>
// kernel: mlp_forward.1
= control target key start
LH: loop header
LB: loop body
LE: loop exit
PB: predicated region body
PF: predicated region fallthrough
CT: control target
= control target key end

     0   :  { %12 = vsyncpa [#allocation3], 0  ;;  %s761_s0 = inlined_call_operand.vmem [shape: f32[32,128], index: 0, kind: input, shape index: {}]   ;;  %s762_s1 = inlined_call_operand.vmem [shape: bf16[128,128], index: 1, kind: input, shape index: {}]   ;;  %s763_s2 = inlined_call_operand.vmem [shape: f32[1,128], index: 2, kind: input, shape index: {}]   ;;  %s764_s3 = inlined_call_operand.hbm [shape: bf16[128,128], index: 3, kind: input, shape index: {}]   ;;  %s765_s4 = inlined_call_operand.vmem [shape: f32[1,128], index: 4, kind: input, shape index: {}]   ;;  %s766_s5 = inlined_call_operand.hbm [shape: bf16[128,128], index: 5, kind: input, shape index: {}]   ;;  %s767_s6 = inlined_call_operand.vmem [shape: f32[1,128], index: 6, kind: input, shape index: {}]   ;;  %s768_s7 = inlined_call_operand.vmem [shape: f32[32,128], index: 7, kind: output, shape index: {}]  }
   0x1   :  { %13 = vsyncpa [#allocation5], 0  ;;  %s636_s24 = smov [#allocation2]   ;;  %s588_s28 = scalar_lea.hbm %s764_s3, 1024 }
   0x2   :  { %s25_s25 = sshll.u32 %s636_s24, 4  ;;  %p589_p0 = scmp.ne.s32.totalorder %s764_s3, %s588_s28  ;;  %s26_s25 = int_to_ptr.vmem [resolvable:$true] %s25_s25 }
   0x3   :  { %p592_p1 = scmp.lt.u32.totalorder %s588_s28, %s764_s3 }
   0x5   :  { %p594_p2 = pnand %p592_p1, %p589_p0 }
   0x7   :  { %597 = shalt.err (!%p594_p2)
}
   0x8   :  { %s598_s10 = scalar_lea.vmem %s26_s25, 1024  ;;  %p603_p4 = scmp.lt.s32.totalorder %s26_s25, %s26_s25 }
   0x9   :  { %p599_p3 = scmp.ne.s32.totalorder %s26_s25, %s598_s10  ;;  %p604_p5 = scmp.lt.s32.totalorder %s598_s10, %s598_s10 }
   0xb   :  { %p605_p6 = por %p604_p5, %p603_p4 }
   0xd   :  { %p606_p7 = pnand %p605_p6, %p599_p3 }
   0xf   :  { %609 = shalt.err (!%p606_p7)
}
  0x10   :  { %s637_s11 = smov 64   ;;  %s638_s12 = smov 4  }
  0x11   :  { %31 = dma.hbm_to_vmem [thread:$0]  %s764_s3, 1024, %s26_s25, [#allocation3], %s637_s11, %s637_s11, %s638_s12  }
  0x12   :  { %s639_s15 = smov [#allocation4]   ;;  %s610_s19 = scalar_lea.hbm %s766_s5, 1024 }
  0x13   :  { %s39_s16 = sshll.u32 %s639_s15, 4  ;;  %p611_p8 = scmp.ne.s32.totalorder %s766_s5, %s610_s19  ;;  %s40_s16 = int_to_ptr.vmem [resolvable:$true] %s39_s16 }
  0x14   :  { %p614_p9 = scmp.lt.u32.totalorder %s610_s19, %s766_s5 }
  0x16   :  { %p616_p10 = pnand %p614_p9, %p611_p8 }
  0x18   :  { %619 = shalt.err (!%p616_p10)
}
  0x19   :  { %s620_s24 = scalar_lea.vmem %s40_s16, 1024  ;;  %p625_p12 = scmp.lt.s32.totalorder %s40_s16, %s40_s16 }
  0x1a   :  { %p621_p11 = scmp.ne.s32.totalorder %s40_s16, %s620_s24  ;;  %p626_p13 = scmp.lt.s32.totalorder %s620_s24, %s620_s24 }
  0x1c   :  { %p627_p0 = por %p626_p13, %p625_p12 }
  0x1e   :  { %p628_p1 = pnand %p627_p0, %p621_p11 }
  0x20   :  { %631 = shalt.err (!%p628_p1)
}
  0x21   :  { %45 = dma.hbm_to_vmem [thread:$0]  %s766_s5, 1024, %s40_s16, [#allocation5], %s637_s11, %s637_s11, %s638_s12  }
  0x22   :  { %632 = dma.done.wait [#allocation3], 1024  }
  0x23   :  { %633 = vsyncadd [#allocation3], 4294966272 }
  0x24   :  { %634 = dma.done.wait [#allocation5], 1024  }
  0x25   :  { %635 = vsyncadd [#allocation5], 4294966272  ;;  %v564_v0 = vld [vmem:[%s762_s1] sm:$0xff]   ;;  %v565_v1 = vld [vmem:[%s762_s1 + $0x8] sm:$0xff]  }
  0x26   :  { %500 = vmatprep.subr.bf16.mxu0 %v564_v0  ;;  %v566_v2 = vld [vmem:[%s762_s1 + $0x10] sm:$0xff]   ;;  %v567_v3 = vld [vmem:[%s762_s1 + $0x18] sm:$0xff]   ;;  %v55_v4 = vld [vmem:[%s761_s0] sm:$0xff] }
  0x27   :  { %501 = vmatpush3.bf16.msra.mxu0 %v564_v0  ;;  %v56_v5 = vld [vmem:[%s761_s0 + $0x8] sm:$0xff]  ;;  %v572_v7 = vld [vmem:[#allocation2] sm:$0xff]   ;;  %v574_v10 = vld [vmem:[#allocation2 + $0x10] sm:$0xff]  }
  0x28   :  { %502 = vmatprep.subr.bf16.mxu0 %v565_v1  ;;  %v76_v6 = vpack.c.bf16 %v56_v5, %v55_v4  ;;  %v573_v8 = vld [vmem:[#allocation2 + $0x8] sm:$0xff]   ;;  %v568_v9 = vld [vmem:[%s762_s1 + $0x20] sm:$0xff]   ;;  %520 = vmatprep.subr.bf16.mxu1 %v572_v7  ;;  %v575_v12 = vld [vmem:[#allocation2 + $0x18] sm:$0xff]  }
  0x29   :  { %521 = vmatpush3.bf16.msra.mxu1 %v572_v7  ;;  %v569_v11 = vld [vmem:[%s762_s1 + $0x28] sm:$0xff]   ;;  %v570_v13 = vld [vmem:[%s762_s1 + $0x30] sm:$0xff]   ;;  %v576_v14 = vld [vmem:[#allocation2 + $0x20] sm:$0xff]  }
  0x2a   :  { %516 = vmatprep.mubr.bf16.mxu0 %v76_v6  ;;  %522 = vmatprep.subr.bf16.mxu1 %v573_v8  ;;  %v571_v15 = vld [vmem:[%s762_s1 + $0x38] sm:$0xff]   ;;  %v577_v16 = vld [vmem:[#allocation2 + $0x28] sm:$0xff]   ;;  %v57_v17 = vld [vmem:[%s761_s0 + $0x10] sm:$0xff] }
  0x2b   :  { %503 = vmatpush3.bf16.msra.mxu0 %v565_v1  ;;  %v58_v18 = vld [vmem:[%s761_s0 + $0x18] sm:$0xff]  ;;  %v578_v20 = vld [vmem:[#allocation2 + $0x30] sm:$0xff]   ;;  %v580_v22 = vld [vmem:[#allocation4] sm:$0xff]  }
  0x2c   :  { %504 = vmatprep.subr.bf16.mxu0 %v566_v2  ;;  %v77_v19 = vpack.c.bf16 %v58_v18, %v57_v17  ;;  %v579_v21 = vld [vmem:[#allocation2 + $0x38] sm:$0xff]   ;;  %v581_v23 = vld [vmem:[#allocation4 + $0x8] sm:$0xff]   ;;  %v582_v24 = vld [vmem:[#allocation4 + $0x10] sm:$0xff]  }
  0x2d   :  { %523 = vmatpush3.bf16.msra.mxu1 %v573_v8  ;;  %v583_v25 = vld [vmem:[#allocation4 + $0x18] sm:$0xff]   ;;  %v584_v26 = vld [vmem:[#allocation4 + $0x20] sm:$0xff]   ;;  %v585_v27 = vld [vmem:[#allocation4 + $0x28] sm:$0xff]  }
  0x2e   :  { %524 = vmatprep.subr.bf16.mxu1 %v574_v10  ;;  %v443_v28 = vld [vmem:[%s763_s2] ss:$0 sm:$0xff]  ;;  %v586_v43 = vld [vmem:[#allocation4 + $0x30] sm:$0xff]   ;;  %v587_v44 = vld [vmem:[#allocation4 + $0x38] sm:$0xff]  }
  0x2f   :  { %505 = vmatpush3.bf16.msra.mxu0 %v566_v2  ;;  %v452_v45 = vld [vmem:[%s765_s4] ss:$0 sm:$0xff] }
  0x30   :  { %506 = vmatprep.subr.bf16.mxu0 %v567_v3  ;;  %v461_v60 = vld [vmem:[%s767_s6] ss:$0 sm:$0xff] }
  0x31   :  { %525 = vmatpush3.bf16.msra.mxu1 %v574_v10 }
  0x32   :  { %526 = vmatprep.subr.bf16.mxu1 %v575_v12 }
  0x33   :  { %507 = vmatpush3.bf16.msra.mxu0 %v567_v3 }
  0x34   :  { %508 = vmatprep.subr.bf16.mxu0 %v568_v9 }
  0x35   :  { %527 = vmatpush3.bf16.msra.mxu1 %v575_v12 }
  0x36   :  { %528 = vmatprep.subr.bf16.mxu1 %v576_v14 }
  0x37   :  { %509 = vmatpush3.bf16.msra.mxu0 %v568_v9 }
  0x38   :  { %510 = vmatprep.subr.bf16.mxu0 %v569_v11 }
  0x39   :  { %529 = vmatpush3.bf16.msra.mxu1 %v576_v14 }
  0x3a   :  { %530 = vmatprep.subr.bf16.mxu1 %v577_v16 }
  0x3b   :  { %511 = vmatpush3.bf16.msra.mxu0 %v569_v11 }
  0x3c   :  { %512 = vmatprep.subr.bf16.mxu0 %v570_v13 }
  0x3d   :  { %531 = vmatpush3.bf16.msra.mxu1 %v577_v16 }
  0x3e   :  { %532 = vmatprep.subr.bf16.mxu1 %v578_v20 }
  0x3f   :  { %513 = vmatpush3.bf16.msra.mxu0 %v570_v13 }
  0x40   :  { %514 = vmatprep.subr.bf16.mxu0 %v571_v15 }
  0x41   :  { %533 = vmatpush3.bf16.msra.mxu1 %v578_v20 }
  0x42   :  { %534 = vmatprep.subr.bf16.mxu1 %v579_v21 }
  0x43   :  { %515 = vmatpush3.bf16.msra.mxu0 %v571_v15 }
  0x44   :  { %540 = vmatprep.subr.bf16.mxu0 %v580_v22 }
  0x45   :  { %535 = vmatpush3.bf16.msra.mxu1 %v579_v21 }
  0x46   :  { %517 = vmatmul.mubr.bf16.vlgmr.msra.gmra.mrb[0].mxu0 %v77_v19 }
  0x47   :  { %541 = vmatpush3.bf16.msra.mxu0 %v580_v22 }
  0x48   :  { %542 = vmatprep.subr.bf16.mxu0 %v581_v23 }
  0x4b   :  { %543 = vmatpush3.bf16.msra.mxu0 %v581_v23 }
  0x4c   :  { %544 = vmatprep.subr.bf16.mxu0 %v582_v24 }
  0x4f   :  { %545 = vmatpush3.bf16.msra.mxu0 %v582_v24 }
  0x50   :  { %546 = vmatprep.subr.bf16.mxu0 %v583_v25 }
  0x53   :  { %547 = vmatpush3.bf16.msra.mxu0 %v583_v25 }
  0x54   :  { %548 = vmatprep.subr.bf16.mxu0 %v584_v26 }
  0x57   :  { %549 = vmatpush3.bf16.msra.mxu0 %v584_v26 }
  0x58   :  { %550 = vmatprep.subr.bf16.mxu0 %v585_v27 }
  0x5b   :  { %551 = vmatpush3.bf16.msra.mxu0 %v585_v27 }
  0x5c   :  { %552 = vmatprep.subr.bf16.mxu0 %v586_v43 }
  0x5f   :  { %553 = vmatpush3.bf16.msra.mxu0 %v586_v43 }
  0x60   :  { %554 = vmatprep.subr.bf16.mxu0 %v587_v44 }
  0x63   :  { %555 = vmatpush3.bf16.msra.mxu0 %v587_v44 }
 0x119   :  { %v518_v29 = vpop.f32.mrb[0].mxu0 }
 0x11a   :  { %v175_v30 = vadd.f32 %v518_v29, %v443_v28  ;;  %v166_v31 = vpop.f32.mrb[1].mxu0 }
 0x11b   :  { %v167_v32 = vadd.f32 %v443_v28, %v166_v31  ;;  %v519_v33 = vpop.f32.mrb[2].mxu0 }
 0x11c   :  { %v178_v34 = vadd.f32 %v519_v33, %v443_v28  ;;  %v169_v35 = vpop.f32.mrb[3].mxu0  ;;  %v183_v37 = vmax.f32 %v175_v30, 0.0 }
 0x11d   :  { %v170_v36 = vadd.f32 %v443_v28, %v169_v35  ;;  %v181_v39 = vmax.f32 %v167_v32, 0.0 }
 0x11e   :  { %v184_v38 = vmax.f32 %v178_v34, 0.0 }
 0x11f   :  { %v182_v40 = vmax.f32 %v170_v36, 0.0 }
 0x120   :  { %v203_v41 = vpack.c.bf16 %v184_v38, %v183_v37 }
 0x121   :  { %v202_v42 = vpack.c.bf16 %v182_v40, %v181_v39 }
 0x123   :  { %536 = vmatprep.mubr.bf16.mxu1 %v202_v42 }
 0x124   :  { %537 = vmatmul.mubr.bf16.vlgmr.msra.gmra.mrb[0].mxu1 %v203_v41 }
 0x1f7   :  { %v538_v46 = vpop.f32.mrb[0].mxu1 }
 0x1f8   :  { %v301_v47 = vadd.f32 %v538_v46, %v452_v45  ;;  %v292_v48 = vpop.f32.mrb[1].mxu1 }
 0x1f9   :  { %v293_v49 = vadd.f32 %v452_v45, %v292_v48  ;;  %v539_v50 = vpop.f32.mrb[2].mxu1 }
 0x1fa   :  { %v304_v51 = vadd.f32 %v539_v50, %v452_v45  ;;  %v295_v52 = vpop.f32.mrb[3].mxu1  ;;  %v309_v54 = vmax.f32 %v301_v47, 0.0 }
 0x1fb   :  { %v296_v53 = vadd.f32 %v452_v45, %v295_v52  ;;  %v307_v56 = vmax.f32 %v293_v49, 0.0 }
 0x1fc   :  { %v310_v55 = vmax.f32 %v304_v51, 0.0 }
 0x1fd   :  { %v308_v57 = vmax.f32 %v296_v53, 0.0 }
 0x1fe   :  { %v329_v58 = vpack.c.bf16 %v310_v55, %v309_v54 }
 0x1ff   :  { %v328_v59 = vpack.c.bf16 %v308_v57, %v307_v56 }
 0x201   :  { %556 = vmatprep.mubr.bf16.mxu0 %v328_v59 }
 0x202   :  { %557 = vmatmul.mubr.bf16.vlgmr.msra.gmra.mrb[4].mxu0 %v329_v58 }
 0x2d5   :  { %v558_v61 = vpop.f32.mrb[4].mxu0 }
 0x2d6   :  { %v427_v62 = vadd.f32 %v558_v61, %v461_v60  ;;  %v418_v63 = vpop.f32.mrb[5].mxu0 }
 0x2d7   :  { %v419_v0 = vadd.f32 %v461_v60, %v418_v63  ;;  %v559_v1 = vpop.f32.mrb[6].mxu0 }
 0x2d8   :  { %435 = vst [vmem:[%s768_s7 + $0x10] sm:$0xff] %v427_v62  ;;  %v430_v2 = vadd.f32 %v559_v1, %v461_v60  ;;  %v421_v3 = vpop.f32.mrb[7].mxu0 }
 0x2d9   :  { %433 = vst [vmem:[%s768_s7] sm:$0xff] %v419_v0  ;;  %v422_v4 = vadd.f32 %v461_v60, %v421_v3 }
 0x2da   :  { %436 = vst [vmem:[%s768_s7 + $0x18] sm:$0xff] %v430_v2 }
 0x2db   :  { %434 = vst [vmem:[%s768_s7 + $0x8] sm:$0xff] %v422_v4 }
 0x2dc   :  { %441 = vsyncpa [#allocation3], 1 }
 0x2dd   :  { %442 = vsyncpa [#allocation5], 1 }

</bundles_post_ra>
